<compile_context>
chip_gen: v7x
topology: tpu7x:2x2x1
jax: 0.10.0
libtpu: 0.0.40
codegen_flags: <defaults>
</compile_context>

<pallas_src>
import jax
import jax.numpy as jnp
from jax import lax
from jax.experimental import pallas as pl
from jax.experimental.pallas import tpu as pltpu


# ---------------------------------------------------------------------------
# Parameter / weight construction (plain-JAX "glue": small batched r x r math)
# ---------------------------------------------------------------------------

def weight_rank_mapping(width, weight_rank_ratio):
    if weight_rank_ratio == 1.0:
        return width - 1
    elif weight_rank_ratio == 0.0:
        return 1
    weight_rank = int(width * weight_rank_ratio)
    assert 0 < weight_rank <= width
    return weight_rank


def get_weights(weights, gamma, residual_identity, scale, quasi_residual=True):
    """Matches LiBroMLP.get_weights (non-distributed branch).

    weights: (D, F, r), gamma: (D, F, 1), residual_identity: (F, r)
    returns W: (D, F, F)
    """
    D, F, r = weights.shape
    if quasi_residual:
        V = residual_identity[None, :, :] + weights * gamma * scale   # (D, F, r)
    else:
        V = weights * gamma
    Sigma = jnp.einsum("dfr,dfs->drs", V, V)                          # (D, r, r)
    eps = jnp.mean(jnp.diagonal(Sigma, axis1=1, axis2=2), axis=-1) * 1e-7
    Sigma = Sigma + eps[:, None, None] * jnp.eye(r, dtype=Sigma.dtype)
    # TODO(synk): batched r x r linear solve has no clean Pallas equivalent;
    # it is tiny parameter-setup work (not the hot path) and stays in plain JAX.
    sol = jnp.linalg.solve(Sigma, jnp.swapaxes(V, 1, 2))              # (D, r, F)
    W = jnp.eye(F, dtype=V.dtype)[None] - 2.0 * jnp.einsum("dfr,drg->dfg", V, sol)
    return W


# ---------------------------------------------------------------------------
# Pallas kernels
# ---------------------------------------------------------------------------

def _matmul_wt(acc_f32, w_bf16):
    """x @ W^T on the MXU: bf16 operands, f32 accumulation, no transpose copy."""
    return lax.dot_general(
        acc_f32.astype(jnp.bfloat16), w_bf16,
        dimension_numbers=(((1,), (1,)), ((), ())),
        preferred_element_type=jnp.float32)


def _libro_resident_kernel(x_ref, w_ref, b_ref, o_ref):
    """All D weights resident in VMEM; depth chain unrolled at trace time.

    x_ref: (TN, Fp)  w_ref: (D, Fp, Fp) bf16  b_ref: (D, 1, Fp) f32  o_ref: (TN, Fp)
    """
    depth = w_ref.shape[0]
    acc = x_ref[...].astype(jnp.float32)
    # Static Python unroll: each step depends on the previous one, so live
    # ranges are naturally bounded; static indices -> zero-cost ref slices.
    for d in range(depth):
        y = _matmul_wt(acc, w_ref[d]) + b_ref[d]
        acc = jnp.maximum(y, 0.0)            # activation = ReLU
    o_ref[...] = acc.astype(o_ref.dtype)


def _libro_depth_grid_kernel_f32out(x_ref, w_ref, b_ref, o_ref):
    """Depth as innermost grid axis; o_ref (f32) is the resident accumulator.

    x_ref: (TN, Fp)  w_ref: (Fp, Fp) bf16  b_ref: (1, Fp) f32  o_ref: (TN, Fp) f32
    """
    d = pl.program_id(1)

    @pl.when(d == 0)
    def _():
        o_ref[...] = x_ref[...].astype(jnp.float32)

    y = _matmul_wt(o_ref[...], w_ref[...]) + b_ref[...]
    o_ref[...] = jnp.maximum(y, 0.0)         # activation = ReLU


def _libro_depth_grid_kernel_scratch(x_ref, w_ref, b_ref, o_ref, acc_ref):
    """Same as above but with a f32 VMEM scratch accumulator (non-f32 output)."""
    d = pl.program_id(1)

    @pl.when(d == 0)
    def _():
        acc_ref[...] = x_ref[...].astype(jnp.float32)

    y = _matmul_wt(acc_ref[...], w_ref[...]) + b_ref[...]
    acc_ref[...] = jnp.maximum(y, 0.0)       # activation = ReLU

    @pl.when(d == pl.num_programs(1) - 1)
    def _():
        o_ref[...] = acc_ref[...].astype(o_ref.dtype)


# ---------------------------------------------------------------------------
# Wrapper
# ---------------------------------------------------------------------------

def _round_up(x, m):
    return ((x + m - 1) // m) * m


def libro_mlp_forward(x, W, bias, *, block_n=256, path="auto",
                      resident_weight_bytes=4 * 1024 * 1024):
    """x: (N, F), W: (depth, F, F), bias: (depth, F) -> (N, F).

    Activation is hard-coded to ReLU (it is a constructor arg in the module).
    """
    N, F = x.shape
    D = W.shape[0]
    out_dtype = x.dtype

    # Lane-dense / MXU-aligned feature padding (multiple of 128). Padded
    # rows/cols of W and bias are zero, so real output columns are unaffected
    # (ReLU(0 + 0) == 0) and padded rows/cols are sliced off at the end.
    Fp = _round_up(F, 128)
    # Batch tile (sublane multiple of 8) and batch padding.
    tn = min(_round_up(N, 8), _round_up(block_n, 8))
    Np = _round_up(N, tn)
    n_tiles = Np // tn

    x_p = jnp.pad(x, ((0, Np - N), (0, Fp - F)))
    w_p = jnp.pad(W.astype(jnp.bfloat16), ((0, 0), (0, Fp - F), (0, Fp - F)))
    b_p = jnp.pad(bias.astype(jnp.float32), ((0, 0), (0, Fp - F))).reshape(D, 1, Fp)

    if path == "auto":
        path = "resident" if D * Fp * Fp * 2 <= resident_weight_bytes else "depth_grid"

    cparams = pltpu.CompilerParams(
        dimension_semantics=(("parallel",) if path == "resident"
                             else ("parallel", "arbitrary")),
        vmem_limit_bytes=32 * 1024 * 1024)

    if path == "resident":
        out_p = pl.pallas_call(
            _libro_resident_kernel,
            out_shape=jax.ShapeDtypeStruct((Np, Fp), out_dtype),
            grid_spec=pltpu.PrefetchScalarGridSpec(
                num_scalar_prefetch=0,
                grid=(n_tiles,),
                in_specs=[
                    pl.BlockSpec((tn, Fp), lambda i: (i, 0)),        # x tile
                    pl.BlockSpec((D, Fp, Fp), lambda i: (0, 0, 0)),  # all W (bf16), resident
                    pl.BlockSpec((D, 1, Fp), lambda i: (0, 0, 0)),   # all bias, resident
                ],
                out_specs=pl.BlockSpec((tn, Fp), lambda i: (i, 0)),
            ),
            compiler_params=cparams,
        )(x_p, w_p, b_p)
    else:
        if out_dtype == jnp.float32:
            kernel = _libro_depth_grid_kernel_f32out
            scratch = []                                   # accumulate directly in o_ref
        else:
            kernel = _libro_depth_grid_kernel_scratch
            scratch = [pltpu.VMEM((tn, Fp), jnp.float32)]
        out_p = pl.pallas_call(
            kernel,
            out_shape=jax.ShapeDtypeStruct((Np, Fp), out_dtype),
            grid_spec=pltpu.PrefetchScalarGridSpec(
                num_scalar_prefetch=0,
                grid=(n_tiles, D),                         # depth innermost, sequential
                in_specs=[
                    pl.BlockSpec((tn, Fp), lambda i, d: (i, 0)),                    # x tile
                    pl.BlockSpec((pl.Squeezed(), Fp, Fp), lambda i, d: (d, 0, 0)),  # W[d] (bf16)
                    pl.BlockSpec((pl.Squeezed(), 1, Fp), lambda i, d: (d, 0, 0)),   # bias[d]
                ],
                out_specs=pl.BlockSpec((tn, Fp), lambda i, d: (i, 0)),
                scratch_shapes=scratch,
            ),
            compiler_params=cparams,
        )(x_p, w_p, b_p)

    return out_p[:N, :F]


# ---------------------------------------------------------------------------
# Reference (pure JAX, f32) for correctness checks
# ---------------------------------------------------------------------------

def libro_mlp_reference(x, W, bias):
    for d in range(W.shape[0]):
        x = jnp.maximum(x @ W[d].T + bias[d], 0.0)
    return x


if __name__ == "__main__":
    def make_params(key, N, F, D, weight_rank_ratio=0.25, random_bias=False):
        r = weight_rank_mapping(F, weight_rank_ratio)
        scale = D ** (-0.5)
        k_x, k_w, k_b = jax.random.split(key, 3)
        x = jax.random.normal(k_x, (N, F), jnp.float32)
        weights = jax.random.normal(k_w, (D, F, r), jnp.float32) / F  # randn / num_features
        bias = (0.1 * jax.random.normal(k_b, (D, F), jnp.float32)
                if random_bias else jnp.zeros((D, F), jnp.float32))
        gamma = jnp.ones((D, F, 1), jnp.float32)
        residual_identity = jnp.zeros((F, r), jnp.float32).at[:r, :r].set(
            jnp.eye(r, dtype=jnp.float32))
        W = get_weights(weights, gamma, residual_identity, scale, quasi_residual=True)
        return x, W, bias

    # 1) Small shapes consistent with the module: num_features=32, depth=4,
    #    weight_rank_ratio=0.25, batch=8 -> resident path (weights in VMEM,
    #    depth unrolled in-kernel, features padded 32 -> 128 lanes).
    x, W, bias = make_params(jax.random.PRNGKey(0), N=8, F=32, D=4)
    out = jax.block_until_ready(libro_mlp_forward(x, W, bias))
    ref = libro_mlp_reference(x, W, bias)
    # bf16 matmul operands with f32 accumulation -> loosened tolerance vs f32 ref.
    assert jnp.allclose(out, ref, atol=1e-1, rtol=1e-1), "resident path mismatch"

    # 2) Also exercise the streaming depth-grid path (still small shapes).
    x2, W2, bias2 = make_params(jax.random.PRNGKey(1), N=64, F=128, D=6,
                                random_bias=True)
    out2 = jax.block_until_ready(
        libro_mlp_forward(x2, W2, bias2, block_n=32, path="depth_grid"))
    ref2 = libro_mlp_reference(x2, W2, bias2)
    assert jnp.allclose(out2, ref2, atol=1e-1, rtol=1e-1), "depth-grid path mismatch"

    print("KERNEL_OK")
</pallas_src>

<mosaic_0001>
module attributes {stable_mosaic.version = 11 : i64} {
  func.func @_libro_resident_kernel(%arg0: i32, %arg1: memref<8x128xf32, #tpu.memory_space<vmem>>, %arg2: memref<4x128x128xbf16, #tpu.memory_space<vmem>>, %arg3: memref<4x1x128xf32, #tpu.memory_space<vmem>>, %arg4: memref<8x128xf32, #tpu.memory_space<vmem>>) attributes {dimension_semantics = [#tpu.dimension_semantics<parallel>], iteration_bounds = array<i64: 1>, scalar_prefetch = 0 : i64, scratch_operands = 0 : i64, tpu.core_type = #tpu.core_type<tc>, window_params = [{transform_indices = @transform_0, window_bounds = array<i64: 8, 128>}, {pipeline_mode = #tpu.pipeline_mode<synchronous>, transform_indices = @transform_1, window_bounds = array<i64: 4, 128, 128>}, {pipeline_mode = #tpu.pipeline_mode<synchronous>, transform_indices = @transform_2, window_bounds = array<i64: 4, 1, 128>}, {transform_indices = @transform_3, window_bounds = array<i64: 8, 128>}]} {
    %c0 = arith.constant 0 : index
    %c0_0 = arith.constant 0 : index
    %0 = vector.load %arg1[%c0, %c0_0] : memref<8x128xf32, #tpu.memory_space<vmem>>, vector<8x128xf32>
    %c0_1 = arith.constant 0 : index
    %c0_2 = arith.constant 0 : index
    %c0_3 = arith.constant 0 : index
    %1 = vector.load %arg2[%c0_1, %c0_2, %c0_3] : memref<4x128x128xbf16, #tpu.memory_space<vmem>>, vector<1x128x128xbf16>
    %2 = vector.shape_cast %1 : vector<1x128x128xbf16> to vector<128x128xbf16>
    %3 = arith.truncf %0 : vector<8x128xf32> to vector<8x128xbf16>
    %cst = arith.constant dense<0.000000e+00> : vector<8x128xf32>
    %4 = tpu.matmul %3, %2, %cst {dimension_numbers = #tpu.dot_dimension_numbers<[1], [1], [0], [0], [0, 0, 1, 0], [], []>} : vector<8x128xbf16>, vector<128x128xbf16>, vector<8x128xf32> -> vector<8x128xf32>
    %c0_4 = arith.constant 0 : index
    %c0_5 = arith.constant 0 : index
    %c0_6 = arith.constant 0 : index
    %5 = vector.load %arg3[%c0_4, %c0_5, %c0_6] : memref<4x1x128xf32, #tpu.memory_space<vmem>>, vector<1x1x128xf32>
    %6 = vector.shape_cast %5 : vector<1x1x128xf32> to vector<1x128xf32>
    %7 = vector.broadcast %6 : vector<1x128xf32> to vector<8x128xf32>
    %8 = arith.addf %4, %7 : vector<8x128xf32>
    %cst_7 = arith.constant 0.000000e+00 : f32
    %9 = vector.broadcast %cst_7 : f32 to vector<8x128xf32>
    %10 = arith.maximumf %8, %9 : vector<8x128xf32>
    %c1 = arith.constant 1 : index
    %c0_8 = arith.constant 0 : index
    %c0_9 = arith.constant 0 : index
    %11 = vector.load %arg2[%c1, %c0_8, %c0_9] : memref<4x128x128xbf16, #tpu.memory_space<vmem>>, vector<1x128x128xbf16>
    %12 = vector.shape_cast %11 : vector<1x128x128xbf16> to vector<128x128xbf16>
    %13 = arith.truncf %10 : vector<8x128xf32> to vector<8x128xbf16>
    %cst_10 = arith.constant dense<0.000000e+00> : vector<8x128xf32>
    %14 = tpu.matmul %13, %12, %cst_10 {dimension_numbers = #tpu.dot_dimension_numbers<[1], [1], [0], [0], [0, 0, 1, 0], [], []>} : vector<8x128xbf16>, vector<128x128xbf16>, vector<8x128xf32> -> vector<8x128xf32>
    %c1_11 = arith.constant 1 : index
    %c0_12 = arith.constant 0 : index
    %c0_13 = arith.constant 0 : index
    %15 = vector.load %arg3[%c1_11, %c0_12, %c0_13] : memref<4x1x128xf32, #tpu.memory_space<vmem>>, vector<1x1x128xf32>
    %16 = vector.shape_cast %15 : vector<1x1x128xf32> to vector<1x128xf32>
    %17 = vector.broadcast %16 : vector<1x128xf32> to vector<8x128xf32>
    %18 = arith.addf %14, %17 : vector<8x128xf32>
    %cst_14 = arith.constant 0.000000e+00 : f32
    %19 = vector.broadcast %cst_14 : f32 to vector<8x128xf32>
    %20 = arith.maximumf %18, %19 : vector<8x128xf32>
    %c2 = arith.constant 2 : index
    %c0_15 = arith.constant 0 : index
    %c0_16 = arith.constant 0 : index
    %21 = vector.load %arg2[%c2, %c0_15, %c0_16] : memref<4x128x128xbf16, #tpu.memory_space<vmem>>, vector<1x128x128xbf16>
    %22 = vector.shape_cast %21 : vector<1x128x128xbf16> to vector<128x128xbf16>
    %23 = arith.truncf %20 : vector<8x128xf32> to vector<8x128xbf16>
    %cst_17 = arith.constant dense<0.000000e+00> : vector<8x128xf32>
    %24 = tpu.matmul %23, %22, %cst_17 {dimension_numbers = #tpu.dot_dimension_numbers<[1], [1], [0], [0], [0, 0, 1, 0], [], []>} : vector<8x128xbf16>, vector<128x128xbf16>, vector<8x128xf32> -> vector<8x128xf32>
    %c2_18 = arith.constant 2 : index
    %c0_19 = arith.constant 0 : index
    %c0_20 = arith.constant 0 : index
    %25 = vector.load %arg3[%c2_18, %c0_19, %c0_20] : memref<4x1x128xf32, #tpu.memory_space<vmem>>, vector<1x1x128xf32>
    %26 = vector.shape_cast %25 : vector<1x1x128xf32> to vector<1x128xf32>
    %27 = vector.broadcast %26 : vector<1x128xf32> to vector<8x128xf32>
    %28 = arith.addf %24, %27 : vector<8x128xf32>
    %cst_21 = arith.constant 0.000000e+00 : f32
    %29 = vector.broadcast %cst_21 : f32 to vector<8x128xf32>
    %30 = arith.maximumf %28, %29 : vector<8x128xf32>
    %c3 = arith.constant 3 : index
    %c0_22 = arith.constant 0 : index
    %c0_23 = arith.constant 0 : index
    %31 = vector.load %arg2[%c3, %c0_22, %c0_23] : memref<4x128x128xbf16, #tpu.memory_space<vmem>>, vector<1x128x128xbf16>
    %32 = vector.shape_cast %31 : vector<1x128x128xbf16> to vector<128x128xbf16>
    %33 = arith.truncf %30 : vector<8x128xf32> to vector<8x128xbf16>
    %cst_24 = arith.constant dense<0.000000e+00> : vector<8x128xf32>
    %34 = tpu.matmul %33, %32, %cst_24 {dimension_numbers = #tpu.dot_dimension_numbers<[1], [1], [0], [0], [0, 0, 1, 0], [], []>} : vector<8x128xbf16>, vector<128x128xbf16>, vector<8x128xf32> -> vector<8x128xf32>
    %c3_25 = arith.constant 3 : index
    %c0_26 = arith.constant 0 : index
    %c0_27 = arith.constant 0 : index
    %35 = vector.load %arg3[%c3_25, %c0_26, %c0_27] : memref<4x1x128xf32, #tpu.memory_space<vmem>>, vector<1x1x128xf32>
    %36 = vector.shape_cast %35 : vector<1x1x128xf32> to vector<1x128xf32>
    %37 = vector.broadcast %36 : vector<1x128xf32> to vector<8x128xf32>
    %38 = arith.addf %34, %37 : vector<8x128xf32>
    %cst_28 = arith.constant 0.000000e+00 : f32
    %39 = vector.broadcast %cst_28 : f32 to vector<8x128xf32>
    %40 = arith.maximumf %38, %39 : vector<8x128xf32>
    %c0_29 = arith.constant 0 : index
    %c0_30 = arith.constant 0 : index
    %41 = vector.load %arg4[%c0_29, %c0_30] : memref<8x128xf32, #tpu.memory_space<vmem>>, vector<8x128xf32>
    tpu.vector_store %arg4[%c0_29, %c0_30], %40 {strides = array<i32>} : memref<8x128xf32, #tpu.memory_space<vmem>>, vector<8x128xf32>,
    return
  }
  func.func @transform_0(%arg0: i32) -> (i32, i32) {
    %c0_i32 = arith.constant 0 : i32
    %c0_i32_0 = arith.constant 0 : i32
    return %arg0, %c0_i32 : i32, i32
  }
  func.func @transform_1(%arg0: i32) -> (i32, i32, i32) {
    %c0_i32 = arith.constant 0 : i32
    %c0_i32_0 = arith.constant 0 : i32
    %c0_i32_1 = arith.constant 0 : i32
    %c0_i32_2 = arith.constant 0 : i32
    return %c0_i32, %c0_i32_0, %c0_i32_1 : i32, i32, i32
  }
  func.func @transform_2(%arg0: i32) -> (i32, i32, i32) {
    %c0_i32 = arith.constant 0 : i32
    %c0_i32_0 = arith.constant 0 : i32
    %c0_i32_1 = arith.constant 0 : i32
    %c0_i32_2 = arith.constant 0 : i32
    return %c0_i32, %c0_i32_0, %c0_i32_1 : i32, i32, i32
  }
  func.func @transform_3(%arg0: i32) -> (i32, i32) {
    %c0_i32 = arith.constant 0 : i32
    %c0_i32_0 = arith.constant 0 : i32
    return %arg0, %c0_i32 : i32, i32
  }
}

</mosaic_0001>

<bundles_post_ra>
// kernel: tpu_custom_call.1
= control target key start
LH: loop header
LB: loop body
LE: loop exit
PB: predicated region body
PF: predicated region fallthrough
CT: control target
= control target key end

     0   :  { %8 = vsyncpa [#allocation3], 0  ;;  %s906_s0 = inlined_call_operand.hbm [shape: f32[8,128], index: 0, kind: input, shape index: {}]   ;;  %s907_s1 = inlined_call_operand.hbm [shape: bf16[4,128,128], index: 1, kind: input, shape index: {}]   ;;  %s908_s2 = inlined_call_operand.vmem [shape: f32[4,1,128], index: 2, kind: input, shape index: {}]   ;;  %s909_s3 = inlined_call_operand.hbm [shape: f32[8,128], index: 3, kind: output, shape index: {}]  }
   0x1   :  { %9 = vsyncpa [#allocation6], 0 }
   0x2   :  { %10 = vsyncpa [#allocation4], 0  ;;  %s784_s12 = smov [#allocation2]   ;;  %s785_s14 = smov [#allocation5]  }
   0x3   :  { %s17_s13 = sshll.u32 %s784_s12, 4  ;;  %s26_s15 = sshll.u32 %s785_s14, 4  ;;  %s18_s13 = int_to_ptr.vmem [resolvable:$true] %s17_s13  ;;  %s811_s15 = int_to_ptr.vmem [resolvable:$true] %s26_s15 }
   0x4   :  { %s712_s18 = scalar_lea.hbm %s906_s0, 128 }
   0x5   :  { %p713_p0 = scmp.ne.s32.totalorder %s906_s0, %s712_s18  ;;  %p716_p1 = scmp.lt.u32.totalorder %s712_s18, %s906_s0 }
   0x7   :  { %p718_p2 = pnand %p716_p1, %p713_p0 }
   0x9   :  { %721 = shalt.err (!%p718_p2)
}
   0xa   :  { %s722_s23 = scalar_lea.vmem %s18_s13, 128  ;;  %p727_p4 = scmp.lt.s32.totalorder %s18_s13, %s18_s13 }
   0xb   :  { %p723_p3 = scmp.ne.s32.totalorder %s18_s13, %s722_s23  ;;  %p728_p5 = scmp.lt.s32.totalorder %s722_s23, %s722_s23 }
   0xd   :  { %p729_p6 = por %p728_p5, %p727_p4 }
   0xf   :  { %p730_p7 = pnand %p729_p6, %p723_p3 }
  0x11   :  { %733 = shalt.err (!%p730_p7)
}
  0x12   :  { %20 = dma.hbm_to_vmem [thread:$0]  %s906_s0, 128, %s18_s13, [#allocation3]  }
  0x13   :  { %s734_s28 = scalar_lea.hbm %s907_s1, 4096 }
  0x14   :  { %p735_p8 = scmp.ne.s32.totalorder %s907_s1, %s734_s28  ;;  %p738_p9 = scmp.lt.u32.totalorder %s734_s28, %s907_s1 }
  0x16   :  { %p740_p10 = pnand %p738_p9, %p735_p8 }
  0x18   :  { %743 = shalt.err (!%p740_p10)
}
  0x19   :  { %s744_s6 = scalar_lea.vmem %s811_s15, 4096  ;;  %p749_p12 = scmp.lt.s32.totalorder %s811_s15, %s811_s15 }
  0x1a   :  { %p745_p11 = scmp.ne.s32.totalorder %s811_s15, %s744_s6  ;;  %p750_p13 = scmp.lt.s32.totalorder %s744_s6, %s744_s6 }
  0x1c   :  { %p751_p0 = por %p750_p13, %p749_p12 }
  0x1e   :  { %p752_p1 = pnand %p751_p0, %p745_p11 }
  0x20   :  { %755 = shalt.err (!%p752_p1)
}
  0x21   :  { %s786_s0 = smov 64   ;;  %s787_s7 = smov 4  }
  0x22   :  { %32 = dma.hbm_to_vmem [thread:$0]  %s907_s1, 4096, %s811_s15, [#allocation6], %s786_s0, %s786_s0, %s787_s7  }
  0x23   :  { %778 = dma.done.wait [#allocation3], 128  }
  0x24   :  { %779 = vsyncadd [#allocation3], 4294967168 }
  0x25   :  { %780 = dma.done.wait [#allocation6], 4096  }
  0x26   :  { %781 = vsyncadd [#allocation6], 4294963200  ;;  %v788_v0 = vmov 0.0   ;;  %vm789_vm0 = vmmov 0   ;;  %v680_v1 = vld [vmem:[#allocation5] sm:$0xff]   ;;  %v681_v2 = vld [vmem:[#allocation5 + $0x8] sm:$0xff]  }
  0x27   :  { %593 = vmatprep.subr.bf16.mxu0 %v788_v0  ;;  %609 = vmatprep.mubr.msk.bf16.mxu0 %vm789_vm0, %v788_v0  ;;  %v688_v3 = vld [vmem:[#allocation5 + $0x40] sm:$0xff]   ;;  %v682_v4 = vld [vmem:[#allocation5 + $0x10] sm:$0xff]   ;;  %v689_v5 = vld [vmem:[#allocation5 + $0x48] sm:$0xff]   ;;  %s790_s17 = smov [#allocation7]  }
  0x28   :  { %613 = vmatprep.subr.bf16.mxu1 %v788_v0  ;;  %629 = vmatprep.mubr.msk.bf16.mxu1 %vm789_vm0, %v788_v0  ;;  %v683_v6 = vld [vmem:[#allocation5 + $0x18] sm:$0xff]   ;;  %v690_v7 = vld [vmem:[#allocation5 + $0x50] sm:$0xff]   ;;  %v684_v8 = vld [vmem:[#allocation5 + $0x20] sm:$0xff]   ;;  %s508_s18 = sshll.u32 %s790_s17, 4  ;;  %s509_s18 = int_to_ptr.vmem [resolvable:$true] %s508_s18 }
  0x29   :  { %594 = vmatpush3.bf16.xpose.msra.mxu0 %v680_v1  ;;  %614 = vmatpush3.bf16.xpose.msra.mxu1 %v688_v3  ;;  %v691_v9 = vld [vmem:[#allocation5 + $0x58] sm:$0xff]   ;;  %v685_v10 = vld [vmem:[#allocation5 + $0x28] sm:$0xff]   ;;  %v692_v11 = vld [vmem:[#allocation5 + $0x60] sm:$0xff]   ;;  %s756_s19 = scalar_lea.vmem %s509_s18, 128  ;;  %p761_p3 = scmp.lt.s32.totalorder %s509_s18, %s509_s18 }
  0x2a   :  { %595 = vmatprep.subr.bf16.mxu0 %v788_v0  ;;  %615 = vmatprep.subr.bf16.mxu1 %v788_v0  ;;  %v686_v12 = vld [vmem:[#allocation5 + $0x30] sm:$0xff]   ;;  %v693_v13 = vld [vmem:[#allocation5 + $0x68] sm:$0xff]   ;;  %v687_v14 = vld [vmem:[#allocation5 + $0x38] sm:$0xff]   ;;  %p757_p2 = scmp.ne.s32.totalorder %s509_s18, %s756_s19  ;;  %p762_p4 = scmp.lt.s32.totalorder %s756_s19, %s756_s19 }
  0x2b   :  { %v694_v15 = vld [vmem:[#allocation5 + $0x70] sm:$0xff]   ;;  %v42_v16 = vld [vmem:[#allocation2] sm:$0xff]  ;;  %v696_v19 = vld [vmem:[#allocation5 + $0x80] sm:$0xff]  }
  0x2c   :  { %v59_v17 = vpack.c.bf16 %v42_v16, %v42_v16  ;;  %v695_v18 = vld [vmem:[#allocation5 + $0x78] sm:$0xff]   ;;  %v697_v20 = vld [vmem:[#allocation5 + $0x88] sm:$0xff]   ;;  %v698_v21 = vld [vmem:[#allocation5 + $0x90] sm:$0xff]   ;;  %p763_p5 = por %p762_p4, %p761_p3 }
  0x2d   :  { %v699_v22 = vld [vmem:[#allocation5 + $0x98] sm:$0xff]   ;;  %v700_v23 = vld [vmem:[#allocation5 + $0xa0] sm:$0xff]   ;;  %v701_v24 = vld [vmem:[#allocation5 + $0xa8] sm:$0xff]  }
  0x2e   :  { %v702_v25 = vld [vmem:[#allocation5 + $0xb0] sm:$0xff]   ;;  %v518_v26 = vld [vmem:[%s908_s2] ss:$0 sm:$0xff]  ;;  %v704_v35 = vld [vmem:[#allocation5 + $0xc0] sm:$0xff]   ;;  %p764_p6 = pnand %p763_p5, %p757_p2 }
  0x2f   :  { %v703_v34 = vld [vmem:[#allocation5 + $0xb8] sm:$0xff]   ;;  %v705_v36 = vld [vmem:[#allocation5 + $0xc8] sm:$0xff]   ;;  %v706_v37 = vld [vmem:[#allocation5 + $0xd0] sm:$0xff]  }
  0x30   :  { %v707_v38 = vld [vmem:[#allocation5 + $0xd8] sm:$0xff]   ;;  %v708_v39 = vld [vmem:[#allocation5 + $0xe0] sm:$0xff]   ;;  %v709_v40 = vld [vmem:[#allocation5 + $0xe8] sm:$0xff]  }
  0x31   :  { %596 = vmatpush3.bf16.xpose.msra.mxu0 %v681_v2  ;;  %616 = vmatpush3.bf16.xpose.msra.mxu1 %v689_v5  ;;  %v710_v41 = vld [vmem:[#allocation5 + $0xf0] sm:$0xff]   ;;  %v528_v42 = vld [vmem:[%s908_s2 + $0x1] ss:$0 sm:$0xff]  ;;  %v538_v51 = vld [vmem:[%s908_s2 + $0x2] ss:$0 sm:$0xff] }
  0x32   :  { %597 = vmatprep.subr.bf16.mxu0 %v788_v0  ;;  %617 = vmatprep.subr.bf16.mxu1 %v788_v0  ;;  %v711_v50 = vld [vmem:[#allocation5 + $0xf8] sm:$0xff]  }
  0x33   :  { %v548_v59 = vld [vmem:[%s908_s2 + $0x3] ss:$0 sm:$0xff] }
  0x39   :  { %598 = vmatpush3.bf16.xpose.msra.mxu0 %v682_v4  ;;  %618 = vmatpush3.bf16.xpose.msra.mxu1 %v690_v7 }
  0x3a   :  { %599 = vmatprep.subr.bf16.mxu0 %v788_v0  ;;  %619 = vmatprep.subr.bf16.mxu1 %v788_v0 }
  0x41   :  { %600 = vmatpush3.bf16.xpose.msra.mxu0 %v683_v6  ;;  %620 = vmatpush3.bf16.xpose.msra.mxu1 %v691_v9 }
  0x42   :  { %601 = vmatprep.subr.bf16.mxu0 %v788_v0  ;;  %621 = vmatprep.subr.bf16.mxu1 %v788_v0 }
  0x49   :  { %602 = vmatpush3.bf16.xpose.msra.mxu0 %v684_v8  ;;  %622 = vmatpush3.bf16.xpose.msra.mxu1 %v692_v11 }
  0x4a   :  { %603 = vmatprep.subr.bf16.mxu0 %v788_v0  ;;  %623 = vmatprep.subr.bf16.mxu1 %v788_v0 }
  0x51   :  { %604 = vmatpush3.bf16.xpose.msra.mxu0 %v685_v10  ;;  %624 = vmatpush3.bf16.xpose.msra.mxu1 %v693_v13 }
  0x52   :  { %605 = vmatprep.subr.bf16.mxu0 %v788_v0  ;;  %625 = vmatprep.subr.bf16.mxu1 %v788_v0 }
  0x59   :  { %606 = vmatpush3.bf16.xpose.msra.mxu0 %v686_v12  ;;  %626 = vmatpush3.bf16.xpose.msra.mxu1 %v694_v15 }
  0x5a   :  { %607 = vmatprep.subr.bf16.mxu0 %v788_v0  ;;  %627 = vmatprep.subr.bf16.mxu1 %v788_v0 }
  0x61   :  { %608 = vmatpush3.bf16.xpose.msra.mxu0 %v687_v14  ;;  %628 = vmatpush3.bf16.xpose.msra.mxu1 %v695_v18 }
  0x62   :  { %633 = vmatprep.subr.bf16.mxu0 %v788_v0  ;;  %653 = vmatprep.subr.bf16.mxu1 %v788_v0 }
  0x68   :  { %610 = vmatmul.mubr.bf16.vlgmr.msra.gmra.mrb[0].mxu0 %v59_v17 }
  0x69   :  { %649 = vmatprep.mubr.msk.bf16.mxu0 %vm789_vm0, %v788_v0  ;;  %634 = vmatpush3.bf16.xpose.msra.mxu0 %v696_v19 }
  0x6a   :  { %635 = vmatprep.subr.bf16.mxu0 %v788_v0 }
  0x71   :  { %636 = vmatpush3.bf16.xpose.msra.mxu0 %v697_v20 }
  0x72   :  { %637 = vmatprep.subr.bf16.mxu0 %v788_v0 }
  0x79   :  { %638 = vmatpush3.bf16.xpose.msra.mxu0 %v698_v21 }
  0x7a   :  { %639 = vmatprep.subr.bf16.mxu0 %v788_v0 }
  0x81   :  { %640 = vmatpush3.bf16.xpose.msra.mxu0 %v699_v22 }
  0x82   :  { %641 = vmatprep.subr.bf16.mxu0 %v788_v0 }
  0x89   :  { %642 = vmatpush3.bf16.xpose.msra.mxu0 %v700_v23 }
  0x8a   :  { %643 = vmatprep.subr.bf16.mxu0 %v788_v0 }
  0x91   :  { %644 = vmatpush3.bf16.xpose.msra.mxu0 %v701_v24 }
  0x92   :  { %645 = vmatprep.subr.bf16.mxu0 %v788_v0 }
  0x99   :  { %646 = vmatpush3.bf16.xpose.msra.mxu0 %v702_v25 }
  0x9a   :  { %647 = vmatprep.subr.bf16.mxu0 %v788_v0 }
  0xa1   :  { %648 = vmatpush3.bf16.xpose.msra.mxu0 %v703_v34 }
 0x13b   :  { %v149_v27 = vpop.f32.mrb[0].mxu0 }
 0x13c   :  { %v150_v28 = vadd.f32 %v518_v26, %v149_v27  ;;  %v611_v29 = vpop.f32.mrb[1].mxu0 }
 0x13d   :  { %v152_v30 = vpop.f32.mrb[2].mxu0 }
 0x13e   :  { %v155_v31 = vmax.f32 %v150_v28, 0.0  ;;  %v612_v32 = vpop.f32.mrb[3].mxu0 }
 0x140   :  { %v173_v33 = vpack.c.bf16 %v155_v31, %v155_v31 }
 0x142   :  { %630 = vmatmul.mubr.bf16.vlgmr.msra.gmra.mrb[0].mxu1 %v173_v33 }
 0x143   :  { %669 = vmatprep.mubr.msk.bf16.mxu1 %vm789_vm0, %v788_v0  ;;  %654 = vmatpush3.bf16.xpose.msra.mxu1 %v704_v35 }
 0x144   :  { %655 = vmatprep.subr.bf16.mxu1 %v788_v0 }
 0x14b   :  { %656 = vmatpush3.bf16.xpose.msra.mxu1 %v705_v36 }
 0x14c   :  { %657 = vmatprep.subr.bf16.mxu1 %v788_v0 }
 0x153   :  { %658 = vmatpush3.bf16.xpose.msra.mxu1 %v706_v37 }
 0x154   :  { %659 = vmatprep.subr.bf16.mxu1 %v788_v0 }
 0x15b   :  { %660 = vmatpush3.bf16.xpose.msra.mxu1 %v707_v38 }
 0x15c   :  { %661 = vmatprep.subr.bf16.mxu1 %v788_v0 }
 0x163   :  { %662 = vmatpush3.bf16.xpose.msra.mxu1 %v708_v39 }
 0x164   :  { %663 = vmatprep.subr.bf16.mxu1 %v788_v0 }
 0x16b   :  { %664 = vmatpush3.bf16.xpose.msra.mxu1 %v709_v40 }
 0x16c   :  { %665 = vmatprep.subr.bf16.mxu1 %v788_v0 }
 0x173   :  { %666 = vmatpush3.bf16.xpose.msra.mxu1 %v710_v41 }
 0x174   :  { %667 = vmatprep.subr.bf16.mxu1 %v788_v0 }
 0x17b   :  { %668 = vmatpush3.bf16.xpose.msra.mxu1 %v711_v50 }
 0x215   :  { %v264_v43 = vpop.f32.mrb[0].mxu1 }
 0x216   :  { %v265_v44 = vadd.f32 %v528_v42, %v264_v43  ;;  %v631_v45 = vpop.f32.mrb[1].mxu1 }
 0x217   :  { %v267_v46 = vpop.f32.mrb[2].mxu1 }
 0x218   :  { %v270_v47 = vmax.f32 %v265_v44, 0.0  ;;  %v632_v48 = vpop.f32.mrb[3].mxu1 }
 0x21a   :  { %v288_v49 = vpack.c.bf16 %v270_v47, %v270_v47 }
 0x21c   :  { %650 = vmatmul.mubr.bf16.vlgmr.msra.gmra.mrb[4].mxu0 %v288_v49 }
 0x2ef   :  { %v379_v52 = vpop.f32.mrb[4].mxu0 }
 0x2f0   :  { %v380_v53 = vadd.f32 %v538_v51, %v379_v52  ;;  %v651_v54 = vpop.f32.mrb[5].mxu0 }
 0x2f1   :  { %v382_v55 = vpop.f32.mrb[6].mxu0 }
 0x2f2   :  { %v385_v56 = vmax.f32 %v380_v53, 0.0  ;;  %v652_v57 = vpop.f32.mrb[7].mxu0 }
 0x2f4   :  { %v403_v58 = vpack.c.bf16 %v385_v56, %v385_v56 }
 0x2f6   :  { %670 = vmatmul.mubr.bf16.vlgmr.msra.gmra.mrb[4].mxu1 %v403_v58 }
 0x3c9   :  { %v494_v60 = vpop.f32.mrb[4].mxu1 }
 0x3ca   :  { %v495_v61 = vadd.f32 %v548_v59, %v494_v60  ;;  %v671_v62 = vpop.f32.mrb[5].mxu1 }
 0x3cb   :  { %v497_v63 = vpop.f32.mrb[6].mxu1 }
 0x3cc   :  { %v500_v0 = vmax.f32 %v495_v61, 0.0  ;;  %v672_v1 = vpop.f32.mrb[7].mxu1 }
 0x3ce   :  { %501 = vst [vmem:[#allocation7] sm:$0xff] %v500_v0 }
 0x3cf   :  { %767 = shalt.err (!%p764_p6)
}
 0x3d0   :  { %s768_s2 = scalar_lea.hbm %s909_s3, 128 }
 0x3d1   :  { %p769_p7 = scmp.ne.s32.totalorder %s909_s3, %s768_s2  ;;  %p772_p8 = scmp.lt.u32.totalorder %s768_s2, %s909_s3 }
 0x3d3   :  { %p774_p9 = pnand %p772_p8, %p769_p7 }
 0x3d5   :  { %777 = shalt.err (!%p774_p9)
}
 0x3d6   :  { %511 = dma.vmem_to_hbm [thread:$0]  %s509_s18, 128, %s909_s3, [#allocation4]  }
 0x3d7   :  { %782 = dma.done.wait [#allocation4], 128  }
 0x3d8   :  { %783 = vsyncadd [#allocation4], 4294967168 }
 0x3d9   :  { %515 = vsyncpa [#allocation3], 1 }
 0x3da   :  { %516 = vsyncpa [#allocation6], 1 }
 0x3db   :  { %517 = vsyncpa [#allocation4], 1 }

</bundles_post_ra>
